<compile_context>
chip_gen: v5e
topology: v5e:2x2
jax: 0.10.0
libtpu: 0.0.40
codegen_flags: <defaults>
</compile_context>

<pallas_src>
import math

import jax
import jax.numpy as jnp
from jax import lax
from jax.experimental import pallas as pl
from jax.experimental.pallas import tpu as pltpu


# ----------------------------------------------------------------------------
# Kernel bodies
# ----------------------------------------------------------------------------
def _kv_kernel_single(x_ref, wk_ref, wv_ref, ok_ref, ov_ref):
    """Single contraction slab: whole hidden dim in VMEM, no accumulator."""
    x = x_ref[...]
    ok_ref[...] = jnp.dot(
        x, wk_ref[...], preferred_element_type=jnp.float32
    ).astype(ok_ref.dtype)
    ov_ref[...] = jnp.dot(
        x, wv_ref[...], preferred_element_type=jnp.float32
    ).astype(ov_ref.dtype)


def _kv_kernel_acc(x_ref, wk_ref, wv_ref, ok_ref, ov_ref, acck_ref, accv_ref):
    """Tiled contraction: f32 VMEM accumulators over the (last) k grid axis."""
    k_step = pl.program_id(1)

    @pl.when(k_step == 0)
    def _init():
        acck_ref[...] = jnp.zeros_like(acck_ref)
        accv_ref[...] = jnp.zeros_like(accv_ref)

    x = x_ref[...]
    acck_ref[...] += jnp.dot(x, wk_ref[...], preferred_element_type=jnp.float32)
    accv_ref[...] += jnp.dot(x, wv_ref[...], preferred_element_type=jnp.float32)

    @pl.when(k_step == pl.num_programs(1) - 1)
    def _finalize():
        ok_ref[...] = acck_ref[...].astype(ok_ref.dtype)
        ov_ref[...] = accv_ref[...].astype(ov_ref.dtype)


# ----------------------------------------------------------------------------
# Tiling helpers
# ----------------------------------------------------------------------------
def _round_up(x: int, m: int) -> int:
    return (x + m - 1) // m * m


def _largest_aligned_divisor(dim: int, cap: int, align: int) -> int:
    """Largest multiple of `align` that divides `dim` and is <= cap (0 if none)."""
    t = (min(cap, dim) // align) * align
    while t >= align:
        if dim % t == 0:
            return t
        t -= align
    return 0


def _block_candidates(dim: int, cap: int, align: int):
    """Valid Pallas block sizes for a (possibly padded) dim, decreasing order.

    A block is valid if it equals `dim` (full-extent exemption from the
    (8,128) rule) or is an `align`-multiple that divides `dim`.
    """
    cands = []
    if dim <= cap:
        cands.append(dim)
    t = (min(cap, dim) // align) * align
    while t >= align:
        if dim % t == 0 and t not in cands:
            cands.append(t)
        t -= align
    if not cands:
        cands.append(dim)
    return cands


def _tpu_vmem_bytes() -> int:
    try:
        return int(pltpu.get_tpu_info().vmem_capacity_bytes)
    except Exception:
        return 64 * 1024 * 1024  # conservative (v7x per-core VMEM)


# ----------------------------------------------------------------------------
# Wrappers
# ----------------------------------------------------------------------------
def prepare_kv_weights(wk, wv):
    """One-time weight prep: PyTorch [out, hidden] -> MXU-friendly [hidden, out].

    Do this once (outside the decode loop); the transpose is a single HBM pass
    over the weights and is then reused by every linear_key_value_prepared call.
    """
    return wk.T, wv.T


def linear_key_value_prepared(x, wk_t, wv_t, *, bm_max=None, bk_max=None):
    """
    Args:
      x:    [batch, seq, hidden]
      wk_t: [hidden, num_heads*key_head_dim]    (prepared layout)
      wv_t: [hidden, num_heads*value_head_dim]  (prepared layout)
    Returns:
      (k, v): ([batch, seq, Dk], [batch, seq, Dv]) in x.dtype.
    """
    B, S, H = x.shape
    Hk, Dk = wk_t.shape
    Hv, Dv = wv_t.shape
    assert Hk == H and Hv == H, "weight hidden dim must match x hidden dim"
    M = B * S
    D = Dk + Dv
    in_dt = x.dtype
    out_dt = x.dtype
    in_sz = jnp.dtype(in_dt).itemsize
    out_sz = jnp.dtype(out_dt).itemsize

    # ---- generation-aware limits ----------------------------------------
    phys_vmem = _tpu_vmem_bytes()
    budget = min(phys_vmem * 3 // 4, 100 * 1024 * 1024)
    if bm_max is None:
        bm_max = 256 if phys_vmem <= 64 * 1024 * 1024 else 512
    if bk_max is None:
        bk_max = 512 if phys_vmem <= 64 * 1024 * 1024 else 1024

    # ---- M (row) axis: avoid padding x whenever a clean tile exists ------
    if M <= bm_max:
        Mp = M
    else:
        d = _largest_aligned_divisor(M, bm_max, 8) if M % 8 == 0 else 0
        # Only pad when M has no usable multiple-of-8 divisor.
        Mp = M if d >= 64 else _round_up(M, min(bm_max, 256))

    # ---- H (contraction) axis --------------------------------------------
    if H <= bk_max or H % 128 == 0:
        Hp = H
    else:
        Hp = _round_up(H, 128)

    bm_cands = _block_candidates(Mp, bm_max, 8)
    bk_cands = _block_candidates(Hp, bk_max, 128)

    def footprint(bm_, bk_):
        buf = 2 * bm_ * bk_ * in_sz          # x tile, double-buffered
        buf += 2 * bk_ * D * in_sz           # wk_t + wv_t tiles
        buf += 2 * bm_ * D * out_sz          # k/v output tiles
        if bk_ < Hp:                         # f32 accumulators (reduction path)
            buf += bm_ * D * 4
        return buf

    # Prefer the largest row tile (weight HBM re-reads scale with Mp/bm), then
    # the largest contraction slab that still fits the VMEM budget.
    bm, bk = bm_cands[-1], bk_cands[-1]
    found = False
    for bm_c in bm_cands:
        for bk_c in bk_cands:
            if footprint(bm_c, bk_c) <= budget:
                bm, bk, found = bm_c, bk_c, True
                break
        if found:
            break
    # TODO(synk): for extremely large Dk+Dv an N-tiled fused kernel would be
    # needed; here we just raise the scoped VMEM limit and take our chances.
    vmem_limit = min(max(budget, footprint(bm, bk) + (4 << 20)),
                     int(phys_vmem * 0.98))

    # ---- padding (rare; no-op for aligned shapes) -------------------------
    x2d = x.reshape(M, H)
    if Mp != M or Hp != H:
        # TODO(synk): a masked ragged edge block would avoid this extra HBM pass.
        x2d = jnp.pad(x2d, ((0, Mp - M), (0, Hp - H)))
    if Hp != H:
        wk_t = jnp.pad(wk_t, ((0, Hp - H), (0, 0)))
        wv_t = jnp.pad(wv_t, ((0, Hp - H), (0, 0)))

    single_slab = (bk == Hp)

    cost = pl.CostEstimate(
        flops=2 * M * H * D,
        transcendentals=0,
        bytes_accessed=(M * H + H * D) * in_sz + M * D * out_sz,
    )
    cparams = pltpu.CompilerParams(
        dimension_semantics=("parallel",) if single_slab
        else ("parallel", "arbitrary"),
        vmem_limit_bytes=vmem_limit,
    )
    out_shape = (jax.ShapeDtypeStruct((Mp, Dk), out_dt),
                 jax.ShapeDtypeStruct((Mp, Dv), out_dt))

    if single_slab:
        grid_spec = pltpu.PrefetchScalarGridSpec(
            num_scalar_prefetch=0,
            grid=(Mp // bm,),
            in_specs=[
                pl.BlockSpec((bm, Hp), lambda i: (i, 0)),   # x
                pl.BlockSpec((Hp, Dk), lambda i: (0, 0)),   # Wk.T (resident)
                pl.BlockSpec((Hp, Dv), lambda i: (0, 0)),   # Wv.T (resident)
            ],
            out_specs=(
                pl.BlockSpec((bm, Dk), lambda i: (i, 0)),
                pl.BlockSpec((bm, Dv), lambda i: (i, 0)),
            ),
        )
        kernel = _kv_kernel_single
    else:
        grid_spec = pltpu.PrefetchScalarGridSpec(
            num_scalar_prefetch=0,
            grid=(Mp // bm, Hp // bk),        # reduction axis k is LAST
            in_specs=[
                pl.BlockSpec((bm, bk), lambda i, k: (i, k)),   # x
                pl.BlockSpec((bk, Dk), lambda i, k: (k, 0)),   # Wk.T
                pl.BlockSpec((bk, Dv), lambda i, k: (k, 0)),   # Wv.T
            ],
            out_specs=(
                pl.BlockSpec((bm, Dk), lambda i, k: (i, 0)),
                pl.BlockSpec((bm, Dv), lambda i, k: (i, 0)),
            ),
            scratch_shapes=[
                pltpu.VMEM((bm, Dk), jnp.float32),
                pltpu.VMEM((bm, Dv), jnp.float32),
            ],
        )
        kernel = _kv_kernel_acc

    k2d, v2d = pl.pallas_call(
        kernel,
        out_shape=out_shape,
        grid_spec=grid_spec,
        compiler_params=cparams,
        cost_estimate=cost,
    )(x2d, wk_t, wv_t)

    if Mp != M:
        k2d = k2d[:M]
        v2d = v2d[:M]
    return k2d.reshape(B, S, Dk), v2d.reshape(B, S, Dv)


def linear_key_value(x, wk, wv, **kwargs):
    """Convenience wrapper taking PyTorch-layout weights ([out, hidden])."""
    wk_t, wv_t = prepare_kv_weights(wk, wv)
    return linear_key_value_prepared(x, wk_t, wv_t, **kwargs)


# ----------------------------------------------------------------------------
# Self-test
# ----------------------------------------------------------------------------
if __name__ == "__main__":
    # Small synthetic config consistent with the module's __init__.
    batch, seq = 2, 8
    hidden_size = 32
    num_heads = 4
    key_head_dim = 16
    value_head_dim = 16

    key = jax.random.PRNGKey(0)
    kx, kwk, kwv = jax.random.split(key, 3)

    x = jax.random.normal(kx, (batch, seq, hidden_size), dtype=jnp.float32)
    bound = 1.0 / math.sqrt(hidden_size)
    wk = jax.random.uniform(kwk, (num_heads * key_head_dim, hidden_size),
                            minval=-bound, maxval=bound, dtype=jnp.float32)
    wv = jax.random.uniform(kwv, (num_heads * value_head_dim, hidden_size),
                            minval=-bound, maxval=bound, dtype=jnp.float32)

    fn = jax.jit(linear_key_value)

    # --- f32 check at the module's small shape (single-slab path) ---------
    k_out, v_out = fn(x, wk, wv)
    jax.block_until_ready((k_out, v_out))

    k_ref = jnp.einsum("bsh,dh->bsd", x, wk, precision=lax.Precision.HIGHEST)
    v_ref = jnp.einsum("bsh,dh->bsd", x, wv, precision=lax.Precision.HIGHEST)
    assert k_out.shape == (batch, seq, num_heads * key_head_dim)
    assert v_out.shape == (batch, seq, num_heads * value_head_dim)
    assert jnp.allclose(k_out, k_ref, atol=2e-2, rtol=2e-2)
    assert jnp.allclose(v_out, v_ref, atol=2e-2, rtol=2e-2)

    # --- bf16 end-to-end on the hot path (prepared / cached weights) ------
    wk_t_bf, wv_t_bf = prepare_kv_weights(wk.astype(jnp.bfloat16),
                                          wv.astype(jnp.bfloat16))
    fn_prep = jax.jit(linear_key_value_prepared)
    kb, vb = fn_prep(x.astype(jnp.bfloat16), wk_t_bf, wv_t_bf)
    jax.block_until_ready((kb, vb))
    assert kb.dtype == jnp.bfloat16 and vb.dtype == jnp.bfloat16
    assert jnp.allclose(kb.astype(jnp.float32), k_ref, atol=6e-2, rtol=6e-2)
    assert jnp.allclose(vb.astype(jnp.float32), v_ref, atol=6e-2, rtol=6e-2)

    # --- larger shape: exercises the multi-step K-reduction path ----------
    B2, S2, H2, Dk2, Dv2 = 2, 136, 1152, 320, 320
    key2 = jax.random.PRNGKey(1)
    kx2, kk2, kv2 = jax.random.split(key2, 3)
    x2 = jax.random.normal(kx2, (B2, S2, H2), dtype=jnp.float32)
    b2 = 1.0 / math.sqrt(H2)
    wk2 = jax.random.uniform(kk2, (Dk2, H2), minval=-b2, maxval=b2,
                             dtype=jnp.float32)
    wv2 = jax.random.uniform(kv2, (Dv2, H2), minval=-b2, maxval=b2,
                             dtype=jnp.float32)
    ko2, vo2 = fn(x2, wk2, wv2)
    jax.block_until_ready((ko2, vo2))
    kr2 = jnp.einsum("bsh,dh->bsd", x2, wk2, precision=lax.Precision.HIGHEST)
    vr2 = jnp.einsum("bsh,dh->bsd", x2, wv2, precision=lax.Precision.HIGHEST)
    assert ko2.shape == (B2, S2, Dk2) and vo2.shape == (B2, S2, Dv2)
    assert jnp.allclose(ko2, kr2, atol=6e-2, rtol=6e-2)
    assert jnp.allclose(vo2, vr2, atol=6e-2, rtol=6e-2)

    print("KERNEL_OK")
</pallas_src>

<mosaic_0001>
module attributes {stable_mosaic.version = 11 : i64} {
  func.func @_kv_kernel_single(%arg0: i32, %arg1: memref<16x32xf32, #tpu.memory_space<vmem>>, %arg2: memref<32x64xf32, #tpu.memory_space<vmem>>, %arg3: memref<32x64xf32, #tpu.memory_space<vmem>>, %arg4: memref<16x64xf32, #tpu.memory_space<vmem>>, %arg5: memref<16x64xf32, #tpu.memory_space<vmem>>) attributes {dimension_semantics = [#tpu.dimension_semantics<parallel>], iteration_bounds = array<i64: 1>, scalar_prefetch = 0 : i64, scratch_operands = 0 : i64, tpu.core_type = #tpu.core_type<tc>, window_params = [{transform_indices = @transform_0, window_bounds = array<i64: 16, 32>}, {pipeline_mode = #tpu.pipeline_mode<synchronous>, transform_indices = @transform_1, window_bounds = array<i64: 32, 64>}, {pipeline_mode = #tpu.pipeline_mode<synchronous>, transform_indices = @transform_2, window_bounds = array<i64: 32, 64>}, {transform_indices = @transform_3, window_bounds = array<i64: 16, 64>}, {transform_indices = @transform_4, window_bounds = array<i64: 16, 64>}]} {
    %c0 = arith.constant 0 : index
    %c0_0 = arith.constant 0 : index
    %0 = vector.load %arg1[%c0, %c0_0] : memref<16x32xf32, #tpu.memory_space<vmem>>, vector<16x32xf32>
    %c0_1 = arith.constant 0 : index
    %c0_2 = arith.constant 0 : index
    %1 = vector.load %arg2[%c0_1, %c0_2] : memref<32x64xf32, #tpu.memory_space<vmem>>, vector<32x64xf32>
    %cst = arith.constant dense<0.000000e+00> : vector<16x64xf32>
    %2 = tpu.matmul %0, %1, %cst {dimension_numbers = #tpu.dot_dimension_numbers<[1], [0], [0], [1], [0, 0, 1, 1], [], []>} : vector<16x32xf32>, vector<32x64xf32>, vector<16x64xf32> -> vector<16x64xf32>
    %c0_3 = arith.constant 0 : index
    %c0_4 = arith.constant 0 : index
    %3 = vector.load %arg4[%c0_3, %c0_4] : memref<16x64xf32, #tpu.memory_space<vmem>>, vector<16x64xf32>
    tpu.vector_store %arg4[%c0_3, %c0_4], %2 {strides = array<i32>} : memref<16x64xf32, #tpu.memory_space<vmem>>, vector<16x64xf32>,
    %c0_5 = arith.constant 0 : index
    %c0_6 = arith.constant 0 : index
    %4 = vector.load %arg3[%c0_5, %c0_6] : memref<32x64xf32, #tpu.memory_space<vmem>>, vector<32x64xf32>
    %cst_7 = arith.constant dense<0.000000e+00> : vector<16x64xf32>
    %5 = tpu.matmul %0, %4, %cst_7 {dimension_numbers = #tpu.dot_dimension_numbers<[1], [0], [0], [1], [0, 0, 1, 1], [], []>} : vector<16x32xf32>, vector<32x64xf32>, vector<16x64xf32> -> vector<16x64xf32>
    %c0_8 = arith.constant 0 : index
    %c0_9 = arith.constant 0 : index
    %6 = vector.load %arg5[%c0_8, %c0_9] : memref<16x64xf32, #tpu.memory_space<vmem>>, vector<16x64xf32>
    tpu.vector_store %arg5[%c0_8, %c0_9], %5 {strides = array<i32>} : memref<16x64xf32, #tpu.memory_space<vmem>>, vector<16x64xf32>,
    return
  }
  func.func @transform_0(%arg0: i32) -> (i32, i32) {
    %c0_i32 = arith.constant 0 : i32
    %c0_i32_0 = arith.constant 0 : i32
    return %arg0, %c0_i32 : i32, i32
  }
  func.func @transform_1(%arg0: i32) -> (i32, i32) {
    %c0_i32 = arith.constant 0 : i32
    %c0_i32_0 = arith.constant 0 : i32
    %c0_i32_1 = arith.constant 0 : i32
    return %c0_i32, %c0_i32_0 : i32, i32
  }
  func.func @transform_2(%arg0: i32) -> (i32, i32) {
    %c0_i32 = arith.constant 0 : i32
    %c0_i32_0 = arith.constant 0 : i32
    %c0_i32_1 = arith.constant 0 : i32
    return %c0_i32, %c0_i32_0 : i32, i32
  }
  func.func @transform_3(%arg0: i32) -> (i32, i32) {
    %c0_i32 = arith.constant 0 : i32
    %c0_i32_0 = arith.constant 0 : i32
    return %arg0, %c0_i32 : i32, i32
  }
  func.func @transform_4(%arg0: i32) -> (i32, i32) {
    %c0_i32 = arith.constant 0 : i32
    %c0_i32_0 = arith.constant 0 : i32
    return %arg0, %c0_i32 : i32, i32
  }
}

</mosaic_0001>

<bundles_post_ra>
// kernel: linear_key_value.1
= control target key start
LH: loop header
LB: loop body
LE: loop exit
PB: predicated region body
PF: predicated region fallthrough
CT: control target
= control target key end

     0   :  { %10 = vsyncpa [#allocation3], 0  ;;  %s384_s0 = inlined_call_operand.hbm [shape: f32[16,32], index: 0, kind: input, shape index: {}]   ;;  %s385_s1 = inlined_call_operand.hbm [shape: f32[32,64], index: 1, kind: input, shape index: {}]   ;;  %s386_s2 = inlined_call_operand.hbm [shape: f32[32,64], index: 2, kind: input, shape index: {}]   ;;  %s387_s3 = inlined_call_operand.hbm [shape: f32[16,64], index: 3, kind: output, shape index: {0}]   ;;  %s388_s4 = inlined_call_operand.hbm [shape: f32[16,64], index: 4, kind: output, shape index: {1}]  }
   0x1   :  { %11 = vsyncpa [#allocation6], 0 }
   0x2   :  { %12 = vsyncpa [#allocation4], 0 }
   0x3   :  { %13 = vsyncpa [#allocation10], 0  ;;  %s31_s17 = sshll.u32 %s385_s1, 4  ;;  %s318_s18 = smov [#allocation5]   ;;  %s32_s17 = int_to_ptr.hbm [resolvable:$true] %s31_s17 }
   0x4   :  { %s33_s19 = sshll.u32 %s318_s18, 4  ;;  %s18_s22 = sshll.u32 %s384_s0, 4  ;;  %s34_s19 = int_to_ptr.vmem [resolvable:$true] %s33_s19  ;;  %s19_s22 = int_to_ptr.hbm [resolvable:$true] %s18_s22 }
   0x5   :  { %s319_s23 = smov 128   ;;  %s320_s24 = smov 8  }
   0x6   :  { %39 = dma.hbm_to_vmem [thread:$0]  %s32_s17, 512, %s34_s19, [#allocation6], %s319_s23, %s319_s23, %s320_s24  }
   0x7   :  { %s321_s25 = smov [#allocation2]   ;;  %s44_s1 = sshll.u32 %s386_s2, 4  ;;  %s45_s1 = int_to_ptr.hbm [resolvable:$true] %s44_s1 }
   0x8   :  { %s20_s26 = sshll.u32 %s321_s25, 4  ;;  %s322_s0 = smov [#allocation7]   ;;  %s21_s26 = int_to_ptr.vmem [resolvable:$true] %s20_s26 }
   0x9   :  { %26 = dma.hbm_to_vmem [thread:$0]  %s19_s22, 256, %s21_s26, [#allocation3], %s319_s23, %s319_s23, %s320_s24  }
   0xa   :  { %s46_s29 = sshll.u32 %s322_s0, 4  ;;  %s47_s29 = int_to_ptr.vmem [resolvable:$true] %s46_s29 }
   0xb   :  { %52 = dma.hbm_to_vmem [thread:$0]  %s45_s1, 512, %s47_s29, [#allocation6], %s319_s23, %s319_s23, %s320_s24  }
   0xc   :  { %310 = dma.done.wait [#allocation3], 256  }
   0xd   :  { %311 = vsyncadd [#allocation3], 4294967040 }
   0xe   :  { %312 = dma.done.wait [#allocation6], 1024  }
   0xf   :  { %313 = vsyncadd [#allocation6], 4294966272  ;;  %v70_v0 = vld [vmem:[#allocation5 + $0x18] sm:$0xff]  ;;  %v69_v2 = vld [vmem:[#allocation5 + $0x10] sm:$0xff]  ;;  %vm71_vm0 = vcmask 261120   ;;  %vm101_vm1 = vcmask 523264  }
  0x10   :  { %v107_v1 = vld [vmem:[#allocation7 + $0x18] sm:$0xff]  ;;  %175 = vmatpush.msra.mxu2 %v70_v0  ;;  %v106_v3 = vld [vmem:[#allocation7 + $0x10] sm:$0xff]  ;;  %v68_v4 = vld [vmem:[#allocation5 + $0x8] sm:$0xff]  ;;  %90 = vmatpush.msra.mxu0 %v70_v0  ;;  %s323_s2 = smov [#allocation8]   ;;  %s139_s7 = sshll.u32 %s387_s3, 4  ;;  %s140_s7 = int_to_ptr.hbm [resolvable:$true] %s139_s7 }
  0x11   :  { %179 = vmatpush.msra.mxu3 %v107_v1  ;;  %v105_v5 = vld [vmem:[#allocation7 + $0x8] sm:$0xff]  ;;  %120 = vmatpush.msra.mxu1 %v107_v1  ;;  %v67_v6 = vld [vmem:[#allocation5] sm:$0xff]  ;;  %v66_v8 = vld [vmem:[#allocation2 + $0x8] sm:$0xff]  ;;  %s137_s30 = sshll.u32 %s323_s2, 4  ;;  %s324_s8 = smov [#allocation9]   ;;  %s138_s30 = int_to_ptr.vmem [resolvable:$true] %s137_s30 }
  0x12   :  { %176 = vmatpush.msra.mxu2 %v69_v2  ;;  %v104_v7 = vld [vmem:[#allocation7] sm:$0xff]  ;;  %91 = vmatpush.msra.mxu0 %v69_v2  ;;  %v65_v9 = vld [vmem:[#allocation2] sm:$0xff]  ;;  %s150_s9 = sshll.u32 %s324_s8, 4  ;;  %s152_s12 = sshll.u32 %s388_s4, 4  ;;  %s151_s9 = int_to_ptr.vmem [resolvable:$true] %s150_s9  ;;  %s153_s12 = int_to_ptr.hbm [resolvable:$true] %s152_s12 }
  0x13   :  { %180 = vmatpush.msra.mxu3 %v106_v3  ;;  %121 = vmatpush.msra.mxu1 %v106_v3 }
  0x14   :  { %177 = vmatpush.msra.mxu2 %v68_v4  ;;  %92 = vmatpush.msra.mxu0 %v68_v4 }
  0x15   :  { %181 = vmatpush.msra.mxu3 %v105_v5  ;;  %122 = vmatpush.msra.mxu1 %v105_v5 }
  0x16   :  { %178 = vmatpush.msra.mxu2 %v67_v6  ;;  %93 = vmatpush.msra.mxu0 %v67_v6 }
  0x17   :  { %182 = vmatpush.msra.mxu3 %v104_v7  ;;  %172 = vmatmul.msk.f32.vlgmr.msra.gmra.mxu2 %vm71_vm0, %v66_v8 }
  0x18   :  { %174 = vmatmul.msk.f32.vlgmr.msra.gmra.mxu3 %vm71_vm0, %v66_v8  ;;  %123 = vmatpush.msra.mxu1 %v104_v7 }
  0x19   :  { %171 = vmatmul.msk.f32.vlgmr.msra.gmra.mxu0 %vm71_vm0, %v65_v9  ;;  %173 = vmatmul.msk.f32.vlgmr.msra.gmra.mxu1 %vm71_vm0, %v65_v9 }
  0x96   :  { %v95_v10 = vpop.f32.mrf.mxu0  ;;  %v125_v11 = vpop.f32.mrf.mxu1 }
  0x97   :  { %102 = vst.msk [vmem:[#allocation8] sm:$0xff] %vm101_vm1, %v95_v10 }
  0x98   :  { %131 = vst.msk [vmem:[#allocation9] sm:$0xff] %vm101_vm1, %v125_v11 }
  0x9a   :  { %v98_v12 = vpop.f32.mrf.mxu2 }
  0x9b   :  { %v128_v13 = vpop.f32.mrf.mxu3  ;;  %103 = vst.msk [vmem:[#allocation8 + $0x8] sm:$0xff] %vm101_vm1, %v98_v12 }
  0x9c   :  { %132 = vst.msk [vmem:[#allocation9 + $0x8] sm:$0xff] %vm101_vm1, %v128_v13  ;;  %145 = dma.vmem_to_hbm [thread:$0]  %s138_s30, 256, %s140_s7, [#allocation4], %s319_s23, %s319_s23, %s320_s24  }
  0x9d   :  { %158 = dma.vmem_to_hbm [thread:$0]  %s151_s9, 256, %s153_s12, [#allocation10], %s319_s23, %s319_s23, %s320_s24  }
  0x9e   :  { %314 = dma.done.wait [#allocation4], 256  }
  0x9f   :  { %315 = vsyncadd [#allocation4], 4294967040 }
  0xa0   :  { %316 = dma.done.wait [#allocation10], 256  }
  0xa1   :  { %317 = vsyncadd [#allocation10], 4294967040 }
  0xa2   :  { %167 = vsyncpa [#allocation3], 1 }
  0xa3   :  { %168 = vsyncpa [#allocation6], 1 }
  0xa4   :  { %169 = vsyncpa [#allocation4], 1 }
  0xa5   :  { %170 = vsyncpa [#allocation10], 1 }

</bundles_post_ra>
